<compile_context>
chip_gen: v7x
topology: tpu7x:2x2x1
jax: 0.10.0
libtpu: 0.0.40
codegen_flags: <defaults>
</compile_context>

<pallas_src>
import jax
import jax.numpy as jnp
from jax import lax
from jax.experimental import pallas as pl
from jax.experimental.pallas import tpu as pltpu

_MIB = 1 << 20


def _round_up(x, m):
    return (x + m - 1) // m * m


# ---------------------------------------------------------------------------
# Kernels
# ---------------------------------------------------------------------------
def _permute_mm_small_kernel(x2_ref, x1_ref, o_ref):
    # x2_ref, x1_ref: (bt, S, S); o_ref: (bt, S, S) or (1, bt*S*S) (flattened,
    # lane-dense store for tiny S).
    # o[b, i, j] = sum_k x2[b, k, i] * x1[b, j, k]
    res = lax.dot_general(
        x2_ref[...],
        x1_ref[...],
        dimension_numbers=(((1,), (2,)), ((0,), (0,))),
        preferred_element_type=jnp.float32,
    )
    o_ref[...] = res.reshape(o_ref.shape).astype(o_ref.dtype)


def _permute_mm_tiled_kernel(x1_ref, x2_ref, o_ref, acc_ref):
    # Canonical MXU orientation -> the K loop is pure vmatmul (no per-step
    # XLU transposes):
    #   acc[j, i] += x1[j, :] @ x2[:, i]
    # x1_ref: (tn, tk)  rows = j (output cols), cols = k
    # x2_ref: (tk, tm)  rows = k,               cols = i (output rows)
    # acc_ref: (tn, tm); o_ref: (tm, tn)
    k = pl.program_id(3)

    @pl.when(k == 0)
    def _():
        acc_ref[...] = jnp.zeros_like(acc_ref)

    acc_ref[...] += jnp.dot(
        x1_ref[...], x2_ref[...], preferred_element_type=jnp.float32
    )

    @pl.when(k == pl.num_programs(3) - 1)
    def _():
        # Single transpose per output tile, amortized over S/tk k-steps.
        # (Direct accumulation into o_ref would force a transposed-operand
        #  dot_general in the K loop, so the f32 acc scratch is kept.)
        o_ref[...] = acc_ref[...].T.astype(o_ref.dtype)


# ---------------------------------------------------------------------------
# Wrapper paths
# ---------------------------------------------------------------------------
def _tiled_path(x1, x2, B, S, dtype, itemsize):
    # Pad S up to a multiple of 256 so we never fall into 128^3 tiles
    # (step-overhead cliff); padded rows/cols are zeros -> contraction safe.
    S_pad = _round_up(S, 256)
    if S_pad != S:
        pad = S_pad - S
        x1 = jnp.pad(x1, ((0, 0), (0, pad), (0, pad)))
        x2 = jnp.pad(x2, ((0, 0), (0, pad), (0, pad)))

    t = 512 if S_pad % 512 == 0 else 256
    tm = tn = t
    tk = 1024 if S_pad % 1024 == 0 else t  # fewer acc RMW passes when possible

    grid = (B, S_pad // tm, S_pad // tn, S_pad // tk)

    # Honest VMEM budget: 3-deep input buffers + double-buffered output + acc.
    n_bufs = 3
    in_block_bytes = (tn * tk + tk * tm) * itemsize
    out_block_bytes = tm * tn * itemsize
    acc_bytes = tn * tm * 4
    vmem_need = n_bufs * in_block_bytes + 2 * out_block_bytes + acc_bytes + 2 * _MIB
    vmem_limit = int(min(max(vmem_need, 16 * _MIB), 48 * _MIB))

    cost = pl.CostEstimate(
        flops=int(2 * B * S_pad * S_pad * S_pad),
        transcendentals=0,
        bytes_accessed=int(
            (S_pad // tn + S_pad // tm + 1) * B * S_pad * S_pad * itemsize
        ),
    )

    out = pl.pallas_call(
        _permute_mm_tiled_kernel,
        out_shape=jax.ShapeDtypeStruct((B, S_pad, S_pad), dtype),
        grid_spec=pltpu.PrefetchScalarGridSpec(
            num_scalar_prefetch=0,
            grid=grid,
            in_specs=[
                # x1 tile: rows = j (output cols), cols = k (contraction)
                pl.BlockSpec(
                    (None, tn, tk),
                    lambda b, i, j, k: (b, j, k),
                    pipeline_mode=pl.Buffered(3),
                ),
                # x2 tile: rows = k (contraction), cols = i (output rows)
                pl.BlockSpec(
                    (None, tk, tm),
                    lambda b, i, j, k: (b, k, i),
                    pipeline_mode=pl.Buffered(3),
                ),
            ],
            out_specs=pl.BlockSpec((None, tm, tn), lambda b, i, j, k: (b, i, j)),
            scratch_shapes=[pltpu.VMEM((tn, tm), jnp.float32)],
        ),
        compiler_params=pltpu.CompilerParams(
            dimension_semantics=("parallel", "parallel", "parallel", "arbitrary"),
            vmem_limit_bytes=vmem_limit,
        ),
        cost_estimate=cost,
    )(x1, x2)

    if S_pad != S:
        out = out[:, :S, :S]
    return out


def _small_path(x1, x2, B, S, dtype, itemsize):
    # Fold batch elements per grid step to amortize ~0.35us/step overhead,
    # capped by a VMEM budget and by B//bt >= 2 (keep both v7x TCs busy).
    budget = 24 * _MIB
    bt = 1
    for cand in range(min(B, 32), 0, -1):
        if B % cand:
            continue
        if 2 * 3 * cand * S * S * itemsize > budget:
            continue
        if B >= 2 and (B // cand) < 2:
            continue
        bt = cand
        break
    G = B // bt

    # Lane-dense output store for tiny S: flatten (bt, S, S) -> (1, bt*S*S).
    flatten = S < 128
    if flatten:
        out_struct = jax.ShapeDtypeStruct((G, 1, bt * S * S), dtype)
        out_spec = pl.BlockSpec((None, 1, bt * S * S), lambda g: (g, 0, 0))
    else:
        out_struct = jax.ShapeDtypeStruct((B, S, S), dtype)
        out_spec = pl.BlockSpec((bt, S, S), lambda g: (g, 0, 0))

    block_bytes = 3 * bt * S * S * itemsize
    vmem_limit = int(min(max(2 * block_bytes + 2 * _MIB, 16 * _MIB), 48 * _MIB))

    cost = pl.CostEstimate(
        flops=int(2 * B * S * S * S),
        transcendentals=0,
        bytes_accessed=int(3 * B * S * S * itemsize),
    )

    out = pl.pallas_call(
        _permute_mm_small_kernel,
        out_shape=out_struct,
        grid_spec=pltpu.PrefetchScalarGridSpec(
            num_scalar_prefetch=0,
            grid=(G,),
            in_specs=[
                pl.BlockSpec((bt, S, S), lambda g: (g, 0, 0)),  # x2
                pl.BlockSpec((bt, S, S), lambda g: (g, 0, 0)),  # x1
            ],
            out_specs=out_spec,
        ),
        compiler_params=pltpu.CompilerParams(
            dimension_semantics=("parallel",),
            vmem_limit_bytes=vmem_limit,
        ),
        cost_estimate=cost,
    )(x2, x1)

    if flatten:
        out = out.reshape(B, S, S)
    return out


def permute_matmul(x1, x2):
    assert x1.shape == x2.shape and x1.ndim == 3
    B, S, S2 = x1.shape
    assert S == S2, "module implies square (B, S, S) inputs"
    dtype = x1.dtype
    itemsize = jnp.dtype(dtype).itemsize

    if S >= 256:
        return _tiled_path(x1, x2, B, S, dtype, itemsize)
    return _small_path(x1, x2, B, S, dtype, itemsize)


if __name__ == "__main__":
    key = jax.random.PRNGKey(0)
    k1, k2 = jax.random.split(key)

    # Small shapes consistent with the module's (B, S, S) square inputs.
    B, S = 2, 8
    x1 = jax.random.normal(k1, (B, S, S), dtype=jnp.float32)
    x2 = jax.random.normal(k2, (B, S, S), dtype=jnp.float32)

    out = permute_matmul(x1, x2)
    out = jax.block_until_ready(out)

    # Reference: matmul(x2.permute(0,2,1), x1.permute(0,2,1))
    ref = jnp.matmul(jnp.swapaxes(x2, 1, 2), jnp.swapaxes(x1, 1, 2))
    assert out.shape == (B, S, S)
    assert jnp.allclose(out, ref, atol=1e-5, rtol=1e-5)

    print("KERNEL_OK")
</pallas_src>

<mosaic_0001>
module attributes {stable_mosaic.version = 11 : i64} {
  func.func @_permute_mm_small_kernel(%arg0: i32, %arg1: memref<1x8x8xf32, #tpu.memory_space<vmem>>, %arg2: memref<1x8x8xf32, #tpu.memory_space<vmem>>, %arg3: memref<1x1x64xf32, #tpu.memory_space<vmem>>) attributes {dimension_semantics = [#tpu.dimension_semantics<parallel>], iteration_bounds = array<i64: 2>, scalar_prefetch = 0 : i64, scratch_operands = 0 : i64, tpu.core_type = #tpu.core_type<tc>, window_params = [{transform_indices = @transform_0, window_bounds = array<i64: 1, 8, 8>}, {transform_indices = @transform_1, window_bounds = array<i64: 1, 8, 8>}, {transform_indices = @transform_2, window_bounds = array<i64: 1, 1, 64>}]} {
    %c0 = arith.constant 0 : index
    %c0_0 = arith.constant 0 : index
    %c0_1 = arith.constant 0 : index
    %0 = vector.load %arg1[%c0, %c0_0, %c0_1] : memref<1x8x8xf32, #tpu.memory_space<vmem>>, vector<1x8x8xf32>
    %c0_2 = arith.constant 0 : index
    %c0_3 = arith.constant 0 : index
    %c0_4 = arith.constant 0 : index
    %1 = vector.load %arg2[%c0_2, %c0_3, %c0_4] : memref<1x8x8xf32, #tpu.memory_space<vmem>>, vector<1x8x8xf32>
    %cst = arith.constant dense<0.000000e+00> : vector<1x8x8xf32>
    %2 = tpu.matmul %0, %1, %cst {dimension_numbers = #tpu.dot_dimension_numbers<[1], [2], [2], [1], [0, 0, 0, 2, 1, 1], [0], [0]>} : vector<1x8x8xf32>, vector<1x8x8xf32>, vector<1x8x8xf32> -> vector<1x8x8xf32>
    %3 = vector.shape_cast %2 : vector<1x8x8xf32> to vector<1x64xf32>
    %c0_5 = arith.constant 0 : index
    %c0_6 = arith.constant 0 : index
    %c0_7 = arith.constant 0 : index
    %4 = vector.load %arg3[%c0_5, %c0_6, %c0_7] : memref<1x1x64xf32, #tpu.memory_space<vmem>>, vector<1x1x64xf32>
    %5 = vector.shape_cast %4 : vector<1x1x64xf32> to vector<1x64xf32>
    %6 = vector.shape_cast %3 : vector<1x64xf32> to vector<1x1x64xf32>
    tpu.vector_store %arg3[%c0_5, %c0_6, %c0_7], %6 {strides = array<i32>} : memref<1x1x64xf32, #tpu.memory_space<vmem>>, vector<1x1x64xf32>,
    return
  }
  func.func @transform_0(%arg0: i32) -> (i32, i32, i32) {
    %c0_i32 = arith.constant 0 : i32
    %c0_i32_0 = arith.constant 0 : i32
    %c0_i32_1 = arith.constant 0 : i32
    return %arg0, %c0_i32, %c0_i32_0 : i32, i32, i32
  }
  func.func @transform_1(%arg0: i32) -> (i32, i32, i32) {
    %c0_i32 = arith.constant 0 : i32
    %c0_i32_0 = arith.constant 0 : i32
    %c0_i32_1 = arith.constant 0 : i32
    return %arg0, %c0_i32, %c0_i32_0 : i32, i32, i32
  }
  func.func @transform_2(%arg0: i32) -> (i32, i32, i32) {
    %c0_i32 = arith.constant 0 : i32
    %c0_i32_0 = arith.constant 0 : i32
    %c0_i32_1 = arith.constant 0 : i32
    return %arg0, %c0_i32, %c0_i32_0 : i32, i32, i32
  }
}

</mosaic_0001>

<bundles_post_ra>
// kernel: tpu_custom_call.1
= control target key start
LH: loop header
LB: loop body
LE: loop exit
PB: predicated region body
PF: predicated region fallthrough
CT: control target
= control target key end

     0   :  { %7 = vsyncpa [#allocation3], 0  ;;  %s958_s0 = inlined_call_operand.hbm [shape: f32[2,8,8], index: 0, kind: input, shape index: {}]   ;;  %s959_s1 = inlined_call_operand.hbm [shape: f32[2,8,8], index: 1, kind: input, shape index: {}]   ;;  %s960_s2 = inlined_call_operand.hbm [shape: f32[2,1,64], index: 2, kind: output, shape index: {}]  }
   0x1   :  { %9 = vsyncpa [#allocation3 + $0x1], 0 }
   0x2   :  { %10 = vsyncpa [#allocation6], 0 }
   0x3   :  { %12 = vsyncpa [#allocation6 + $0x1], 0 }
   0x4   :  { %13 = vsyncpa [#allocation4], 0 }
   0x5   :  { %15 = vsyncpa [#allocation4 + $0x1], 0  ;;  %s745_s9 = smov 0   ;;  %s747_s10 = smov 0  }
   0x6   :  { %s749_s11 = smov 0   ;;  %s751_s12 = smov 0  }
   0x7 LB: > { %s766_s13 = sadd.s32 4294967295, %s714_s12   ;;  %s500_s14 = sadd.s32 4294967294, %s714_s12   ;;  %s714_s12 = sphi %s751_s12, %s979_s12   ;;  %s710_s11 = sphi %s749_s11, %s978_s11   ;;  %s706_s10 = sphi %s747_s10, %s977_s10   ;;  %s702_s9 = sphi %s745_s9, %s976_s9  }
   0x8   : > { %s770_s15 = sadd.s32 1, %s714_s12   ;;  %s28_s16 = sadd.s32 1, %s710_s11 }
   0x9   : > { %s25_s17 = ssub.s32 %s714_s12, %s770_s15  ;;  %p35_p0 = scmp.ne.s32.totalorder %s710_s11, %s706_s10 }
   0xa   : > { %p26_p1 = scmp.eq.s32.totalorder %s25_s17, 0  ;;  %p36_p2 = scmp.eq.s32.totalorder %s714_s12, 0 }
   0xb   : > { %p41_p3 = scmp.ne.s32.totalorder %s706_s10, %s702_s9  ;;  %p42_p4 = scmp.eq.s32.totalorder %s766_s13, 0 }
   0xc   : > { %s782_s18 = scalar_select %p26_p1, %s710_s11, %s28_s16  }
   0xd   : > { %p784_p5 = por %p36_p2, %p35_p0  ;;  %p788_p6 = por %p42_p4, %p41_p3 }
   0xe   : > { %p91_p7 = scmp.eq.s32.totalorder %s766_s13, 1  ;;  %p97_p8 = scmp.eq.s32.totalorder %s500_s14, 1 }
   0xf   : > { %s964_s20 = scalar_select %p788_p6, 1, 0 }
  0x10   : > { %p539_p10 = scmp.lt.s32.totalorder %s714_s12, 2  ;;  %p795_p11 = por %p91_p7, %p35_p0 }
  0x11   : > { %p799_p12 = por %p97_p8, %p41_p3  ;;  %s804_s23 = sand.u32 1, %s710_s11  }
  0x12   : > { %s965_s21 = scalar_select %p795_p11, 1, 0 }
  0x13   : > { %s966_s22 = scalar_select %p799_p12, 1, 0 }
  0x14   : > { %s504_s24 = sshll.u32 %s714_s12, 7  ;;  %s503_s25 = sshll.u32 %s804_s23, 3 }
  0x15   : > { %s813_s28 = scalar_lea.hbm %s958_s0, %s504_s24  ;;  %s121_s29 = scalar_lea.vmem [#allocation2], %s503_s25 }
  0x16   : > { %s128_s30 = sshll.u32 %s121_s29, 4  ;;  %p819_p13 = pnand %p539_p10, %p784_p5  ;;  %s823_s30 = int_to_ptr.vmem [resolvable:$true] %s128_s30 }
  0x17   : > { %s118_s4 = scalar_lea.sflag [#allocation3], %s804_s23  ;;  %s584_s5 = scalar_lea.hbm %s813_s28, 128 }
  0x18   : > { %p585_p2 = scmp.ne.s32.totalorder %s813_s28, %s584_s5  ;;  %p586_p3 = pneg %p819_p13 }
  0x19   : > { %s589_s8 = scalar_lea.hbm %s958_s0, 256  ;;  %p590_p5 = scmp.lt.u32.totalorder %s813_s28, %s958_s0 }
  0x1a   : > { %p587_p4 = pnand %p586_p3, %p585_p2  ;;  %p591_p8 = scmp.lt.u32.totalorder %s589_s8, %s584_s5 }
  0x1b   : > { %p593_p9 = scmp.lt.u32.totalorder %s584_s5, %s813_s28 }
  0x1c   : > { %p588_p7 = pneg %p587_p4  ;;  %p592_p10 = por %p591_p8, %p590_p5 }
  0x1e   : > { %p594_p0 = por %p593_p9, %p592_p10 }
  0x20   : > { %p595_p1 = pnand %p594_p0, %p588_p7 }
  0x22   : > { %598 = shalt.err (!%p595_p1)
}
  0x23   : > { %s599_s17 = scalar_lea.vmem %s823_s30, 128  ;;  %s716_s19 = smov [#allocation2]  }
  0x24   : > { %p600_p2 = scmp.ne.s32.totalorder %s823_s30, %s599_s17  ;;  %s604_s26 = sshll.u32 %s716_s19, 4  ;;  %s605_s26 = int_to_ptr.vmem [resolvable:$false] %s604_s26 }
  0x25   : > { %s606_s27 = scalar_lea.vmem %s605_s26, 256  ;;  %p607_p11 = scmp.lt.s32.totalorder %s823_s30, %s605_s26 }
  0x26   : > { %p602_p4 = pnand %p600_p2, %p586_p3  ;;  %p608_p5 = scmp.lt.s32.totalorder %s606_s27, %s599_s17 }
  0x28   : > { %p603_p12 = pneg %p602_p4  ;;  %p609_p8 = por %p608_p5, %p607_p11 }
  0x2a   : > { %p610_p9 = pnand %p609_p8, %p603_p12 }
  0x2c   : > { %613 = shalt.err (!%p610_p9)
}
  0x2d   : > { %531 = dma.hbm_to_vmem [thread:$0]  (!%p819_p13), %s813_s28, 128, %s823_s30, %s118_s4  }
  0x2e   : > { %p968_p0 = scmp.lt.s32.totalorder %s714_s12, 3  ;;  %p969_p1 = scmp.ge.s32.totalorder %s714_s12, 1 }
  0x2f   : > { %s866_s7 = scalar_lea.hbm %s959_s1, %s504_s24  ;;  %s139_s8 = scalar_lea.vmem [#allocation5], %s503_s25 }
  0x30   : > { %p857_p7 = pnand %p969_p1, %p968_p0  ;;  %s146_s14 = sshll.u32 %s139_s8, 4  ;;  %s147_s14 = int_to_ptr.vmem [resolvable:$true] %s146_s14 }
  0x31   : > { %s136_s28 = scalar_lea.sflag [#allocation6], %s804_s23  ;;  %s614_s30 = scalar_lea.hbm %s866_s7, 128 }
  0x32   : > { %s970_s29 = scalar_select %p857_p7, 1, 0 }
  0x33   : > { %p615_p11 = scmp.ne.s32.totalorder %s866_s7, %s614_s30  ;;  %s619_s24 = scalar_lea.hbm %s959_s1, 256 }
  0x34   : > { %p620_p2 = scmp.lt.u32.totalorder %s866_s7, %s959_s1  ;;  %p621_p4 = scmp.lt.u32.totalorder %s619_s24, %s614_s30 }
  0x35   : > { %p617_p12 = pnand %p615_p11, %p586_p3  ;;  %p623_p8 = scmp.lt.u32.totalorder %s614_s30, %s866_s7 }
  0x36   : > { %p622_p5 = por %p621_p4, %p620_p2 }
  0x37   : > { %p618_p10 = pneg %p617_p12 }
  0x38   : > { %p624_p9 = por %p623_p8, %p622_p5 }
  0x3a   : > { %p625_p0 = pnand %p624_p9, %p618_p10 }
  0x3c   : > { %628 = shalt.err (!%p625_p0)
}
  0x3d   : > { %s629_s23 = scalar_lea.vmem %s147_s14, 128  ;;  %s717_s25 = smov [#allocation5]  }
  0x3e   : > { %p630_p1 = scmp.ne.s32.totalorder %s147_s14, %s629_s23  ;;  %s634_s26 = sshll.u32 %s717_s25, 4  ;;  %s635_s26 = int_to_ptr.vmem [resolvable:$false] %s634_s26 }
  0x3f   : > { %s636_s27 = scalar_lea.vmem %s635_s26, 256  ;;  %p637_p6 = scmp.lt.s32.totalorder %s147_s14, %s635_s26 }
  0x40   : > { %p632_p11 = pnand %p630_p1, %p586_p3  ;;  %p638_p7 = scmp.lt.s32.totalorder %s636_s27, %s629_s23 }
  0x42   : > { %p633_p12 = pneg %p632_p11  ;;  %p639_p2 = por %p638_p7, %p637_p6 }
  0x44   : > { %p640_p4 = pnand %p639_p2, %p633_p12 }
  0x46   : > { %643 = shalt.err (!%p640_p4)
}
  0x47   : > { %534 = dma.hbm_to_vmem [thread:$0]  (!%p819_p13), %s866_s7, 128, %s147_s14, %s136_s28  }
  0x48   : > { %p971_p10 = scmp.ne.s32.totalorder %s970_s29, 0 }
  0x49   : > { %s893_s5 = sand.u32 (!%p971_p10), 1, %s706_s10   ;;  %p972_p3 = scmp.ne.s32.totalorder (!%p971_p10), %s964_s20, 0 }
  0x4a   : > { %155 = sbr.rel (%p971_p10) target bundleno = 583 (0x247), region = 28  ;;  %s508_s6 = sshll.u32 (!%p971_p10), %s893_s5, 3 }
  0x4b   : > { %s158_s8 = scalar_lea.sflag (!%p971_p10), [#allocation3], %s893_s5  ;;  %s161_s30 = scalar_lea.vmem (!%p971_p10), [#allocation2], %s508_s6 }
  0x51   : > { %689 = dma.done.wait (%p972_p3), %s158_s8, 128  }
  0x52   : > { %691 = vsyncadd (%p972_p3), %s158_s8, 4294967168  ;;  %s167_s3 = scalar_lea.sflag [#allocation6], %s893_s5  ;;  %s170_s7 = scalar_lea.vmem [#allocation5], %s508_s6 }
  0x53   : > { %693 = dma.done.wait (%p972_p3), %s167_s3, 128  }
  0x54   : > { %695 = vsyncadd (%p972_p3), %s167_s3, 4294967168  ;;  %v718_v0 = vmov 0.0   ;;  %vm719_vm0 = vmmov 0   ;;  %vm229_vm1 = vcmask 64512   ;;  %v195_v1 = vld [vmem:[%s161_s30] sm:$0xff]  ;;  %v196_v2 = vld [vmem:[%s170_s7] sm:$0xff]  ;;  %v310_v6 = vlaneseq }
  0x55   : > { %517 = vmatprep.subr.mxu0 %v718_v0  ;;  %519 = vmatprep.mubr.msk.f32.mxu0 %vm719_vm0, %v718_v0  ;;  %v720_v4 = vmov 1983009808   ;;  %v721_v7 = vmov 1934713408   ;;  %s722_s20 = smov 8   ;;  %s723_s29 = smov 16  }
  0x56   : > { %197 = vxpose.xlu0.b32.start.end [1/1] (short) (narrow) %v195_v1, 8  ;;  %518 = vmatpush3.xpose.msk.msra.mxu0 %vm229_vm1, %v196_v2  ;;  %v308_v5 = vunpack.c.l.s4 %v720_v4  ;;  %v323_v8 = vunpack.c.l.s4 %v721_v7  ;;  %v311_v10 = vshrl.u32 %v310_v6, 7  ;;  %s724_s14 = smov 32   ;;  %s725_s28 = smov 24   ;;  %vm384_vm2 = vcmask 130048  }
  0x57   : > { %s726_s4 = smov 40   ;;  %s727_s16 = smov 48   ;;  %vm386_vm3 = vcmask 195584   ;;  %vm388_vm4 = vcmask 261120   ;;  %vm390_vm5 = vcmask 326656   ;;  %vm392_vm6 = vcmask 392192  }
  0x58   : > { %v309_v9 = vunpack.c.0.s8 %v308_v5  ;;  %v324_v11 = vunpack.c.0.s8 %v323_v8  ;;  %s728_s24 = smov 56   ;;  %s512_s17 = sshll.u32 %s766_s13, 4  ;;  %vm394_vm7 = vcmask 457728   ;;  %vm396_vm8 = vcmask 516096  }
  0x59   : > { %s194_s19 = scalar_lea.vmem [#allocation7], %s893_s5  ;;  %s914_s27 = scalar_lea.hbm %s960_s2, %s512_s17 }
  0x5a   : > { %v312_v12 = vsub.s32 %v309_v9, %v311_v10  ;;  %v327_v13 = vsub.s32 %v324_v11, %v311_v10  ;;  %s411_s23 = sshll.u32 %s194_s19, 4  ;;  %s399_s13 = scalar_lea.sflag [#allocation4], %s893_s5  ;;  %s916_s23 = int_to_ptr.vmem [resolvable:$true] %s411_s23 }
  0x5b   : > { %s644_s6 = scalar_lea.vmem %s916_s23, 16  ;;  %p973_p13 = scmp.ne.s32.totalorder %s965_s21, 0 }
  0x5c   : > { %p645_p6 = scmp.ne.s32.totalorder %s916_s23, %s644_s6  ;;  %s729_s8 = smov [#allocation7]  }
  0x5d   : > { %s648_s30 = sshll.u32 %s729_s8, 4  ;;  %s649_s30 = int_to_ptr.vmem [resolvable:$false] %s648_s30 }
  0x5e   : > { %p646_p7 = pnand %p645_p6, %p973_p13  ;;  %s650_s3 = scalar_lea.vmem %s649_s30, 32 }
  0x5f   : > { %p651_p8 = scmp.lt.s32.totalorder %s916_s23, %s649_s30  ;;  %p652_p9 = scmp.lt.s32.totalorder %s650_s3, %s644_s6 }
  0x60   : > { %p647_p5 = pneg %p646_p7 }
  0x61   : > { %p653_p0 = por %p652_p9, %p651_p8 }
  0x63   : > { %p654_p1 = pnand %p653_p0, %p647_p5 }
  0xd6   : > { %v213_v3 = vpop.trf.xlu0 }
  0xd7   : > { %520 = vmatmul.mubr.msk.f32.vlgmr.msra.gmra.mrb[0].mxu0 %vm229_vm1, %v213_v3 }
 0x1aa   : > { %v302_v14 = vpop.f32.mrb[0].mxu0 }
 0x1ab   : > { %v306_v15 = vcombine.high %v302_v14, %v718_v0  ;;  %v313_v16 = vrot.slane %v302_v14, %v312_v12  ;;  %v521_v17 = vpop.f32.mrb[1].mxu0 }
 0x1ad   : > { %v328_v18 = vrot.slane %v313_v16, %v327_v13  ;;  %v321_v19 = vcombine.high %v313_v16, %v718_v0  ;;  %v320_v20 = vrot.slane %v306_v15, %v312_v12 }
 0x1af   : > { %v351_v21 = vcombine.high %v328_v18, %v718_v0  ;;  %v335_v22 = vrot.slane %v321_v19, %v327_v13  ;;  %v343_v23 = vrot.slane %v320_v20, %v327_v13  ;;  %v336_v25 = vcombine.high %v320_v20, %v718_v0 }
 0x1b1   : > { %356 = vrot.lane.b32.xlu0 %v351_v21, %s722_s20  ;;  %360 = vrot.lane.b32.xlu1 %v335_v22, %s723_s29  ;;  %v352_v24 = vcombine.high %v335_v22, %v718_v0  ;;  %v353_v26 = vcombine.high %v343_v23, %v718_v0  ;;  %v350_v27 = vrot.slane %v336_v25, %v327_v13 }
 0x1b3   : > { %v354_v28 = vcombine.high %v350_v27, %v718_v0 }
 0x1b5   : > { %368 = vrot.lane.b32.xlu1 %v343_v23, %s724_s14 }
 0x1b9   : > { %364 = vrot.lane.b32.xlu1 %v352_v24, %s725_s28 }
 0x1bd   : > { %372 = vrot.lane.b32.xlu1 %v353_v26, %s726_s4 }
 0x1c1   : > { %376 = vrot.lane.b32.xlu1 %v350_v27, %s727_s16 }
 0x1c5   : > { %380 = vrot.lane.b32.xlu1 %v354_v28, %s728_s24 }
 0x223   : > { %v361_v29 = vpop.permute.xlu1 %360  ;;  %v357_v31 = vpop.permute.xlu0 %356 }
 0x224   : > { %v383_v33 = vsel %vm229_vm1, %v328_v18, %v357_v31 }
 0x225   : > { %v385_v35 = vsel %vm384_vm2, %v383_v33, %v361_v29 }
 0x227   : > { %v369_v30 = vpop.permute.xlu1 %368 }
 0x22b   : > { %v365_v32 = vpop.permute.xlu1 %364 }
 0x22c   : > { %v387_v36 = vsel %vm386_vm3, %v385_v35, %v365_v32 }
 0x22d   : > { %v389_v38 = vsel %vm388_vm4, %v387_v36, %v369_v30 }
 0x22f   : > { %v373_v34 = vpop.permute.xlu1 %372 }
 0x230   : > { %v391_v39 = vsel %vm390_vm5, %v389_v38, %v373_v34 }
 0x233   : > { %v377_v37 = vpop.permute.xlu1 %376 }
 0x234   : > { %v393_v40 = vsel %vm392_vm6, %v391_v39, %v377_v37 }
 0x237   : > { %v381_v41 = vpop.permute.xlu1 %380 }
 0x238   : > { %v395_v42 = vsel %vm394_vm7, %v393_v40, %v381_v41 }
 0x239   : > { %397 = vst.msk [vmem:[%s194_s19] sm:$0x1] %vm396_vm8, %v395_v42 }
 0x23a   : > { %657 = shalt.err (!%p654_p1)
}
 0x23b   : > { %s658_s5 = scalar_lea.hbm %s914_s27, 16  ;;  %s662_s29 = scalar_lea.hbm %s960_s2, 32 }
 0x23c   : > { %p659_p11 = scmp.ne.s32.totalorder %s914_s27, %s658_s5  ;;  %p663_p4 = scmp.lt.u32.totalorder %s914_s27, %s960_s2 }
 0x23d   : > { %p664_p10 = scmp.lt.u32.totalorder %s662_s29, %s658_s5  ;;  %p666_p6 = scmp.lt.u32.totalorder %s658_s5, %s914_s27 }
 0x23e   : > { %p660_p12 = pnand %p659_p11, %p973_p13 }
 0x23f   : > { %p665_p3 = por %p664_p10, %p663_p4 }
 0x240   : > { %p661_p2 = pneg %p660_p12 }
 0x241   : > { %p667_p7 = por %p666_p6, %p665_p3 }
 0x243   : > { %p668_p5 = pnand %p667_p7, %p661_p2 }
 0x245   : > { %671 = shalt.err (!%p668_p5)
}
 0x246   : > { %526 = dma.vmem_to_hbm [thread:$0]  (%p973_p13), %s916_s23, 16, %s914_s27, %s399_s13  }
 0x247 PF: > { %s423_s4 = sand.u32 1, %s702_s9   ;;  %p974_p8 = scmp.ne.s32.totalorder %s966_s22, 0 }
 0x248   : > { %p975_p9 = scmp.ge.s32.totalorder %s714_s12, 2  ;;  %s424_s16 = scalar_lea.sflag [#allocation4], %s423_s4 }
 0x24a   : > { %p536_p0 = pnand %p975_p9, %p974_p8 }
 0x24c   : > { %697 = dma.done.wait (!%p536_p0), %s424_s16, 16  }
 0x24d   : > { %699 = vsyncadd (!%p536_p0), %s424_s16, 4294967280  ;;  %p18_p1 = scmp.ge.s32.totalorder %s770_s15, 4   ;;  %s976_s9 = smov %s706_s10 }
 0x24e   : > { %s977_s10 = smov %s710_s11  ;;  %s978_s11 = smov %s782_s18 }
 0x24f   : > { %s979_s12 = smov %s770_s15  ;;  %20 = sbr.rel (!%p18_p1) target bundleno = 7 (0x7), region = 86 }
 0x256   :  { %428 = vsyncpa [#allocation3], 1 }
 0x257   :  { %430 = vsyncpa [#allocation3 + $0x1], 1 }
 0x258   :  { %431 = vsyncpa [#allocation6], 1 }
 0x259   :  { %433 = vsyncpa [#allocation6 + $0x1], 1 }
 0x25a   :  { %434 = vsyncpa [#allocation4], 1 }
 0x25b   :  { %436 = vsyncpa [#allocation4 + $0x1], 1 }

</bundles_post_ra>
